<compile_context>
chip_gen: v7x
topology: tpu7x:2x2x1
jax: 0.10.0
libtpu: 0.0.40
codegen_flags: <defaults>
</compile_context>

<pallas_src>
from functools import partial

import jax
import jax.numpy as jnp
import numpy as np
from jax import lax
from jax.experimental import pallas as pl
from jax.experimental.pallas import tpu as pltpu


def _round_up(a: int, b: int) -> int:
    return ((a + b - 1) // b) * b


def _patch_embed_kernel(p_ref, w_ref, b_ref, o_ref):
    # p_ref: (TM, K)  patches tile (lane-dense over K)
    # w_ref: (K, TE)  projection weight tile (resident across the row loop)
    # b_ref: (1, TE)  bias tile
    # o_ref: (TM, TE) output tile
    o_ref[...] = (
        jnp.dot(p_ref[...], w_ref[...], preferred_element_type=jnp.float32)
        + b_ref[...]
    ).astype(o_ref.dtype)


def patch_embed(x, w, b, *, patch_size, stride, tm=256, te=128):
    """PatchEmbed forward.

    x: (B, C, H, W) f32
    w: (E, C, ph, pw) f32   (PyTorch Conv2d OIHW weight)
    b: (E,) f32             (Conv2d bias)
    returns: (B, num_patches, E) f32   (== proj -> flatten(2).transpose(1,2))
    """
    B, C, H, W = x.shape
    E = w.shape[0]
    ph, pw = patch_size
    # Non-overlapping patchify (kernel_size == stride), as in the module's
    # defaults (patch_size=(64,64), stride=64).
    # TODO(synk): overlapping patches (stride != patch_size) would need an
    # in-kernel / strided im2col gather; not implemented here.
    assert stride == ph and stride == pw, "stride must equal patch size"
    assert H % ph == 0 and W % pw == 0, "image must be divisible by patch size"

    gh, gw = H // ph, W // pw
    P = gh * gw
    K = C * ph * pw
    M = B * P

    # ---- im2col (host-side layout plumbing; matmul itself runs in-kernel) ----
    # patches[b*P + i*gw + j, c*ph*pw + ky*pw + kx] = x[b, c, i*ph+ky, j*pw+kx]
    patches = x.reshape(B, C, gh, ph, gw, pw)
    patches = patches.transpose(0, 2, 4, 1, 3, 5).reshape(M, K)
    wt = w.reshape(E, K).T.astype(jnp.float32)            # (K, E)
    bias = b.astype(jnp.float32).reshape(1, E)

    # ---- tiling / padding ----------------------------------------------------
    TM = min(tm, _round_up(M, 8))          # row tile (multiple of 8 sublanes)
    Mp = _round_up(M, TM)
    TE = min(te, _round_up(E, 128))        # embed tile (multiple of 128 lanes)
    Ep = _round_up(E, TE)

    patches = jnp.pad(patches.astype(jnp.float32), ((0, Mp - M), (0, 0)))
    wt = jnp.pad(wt, ((0, 0), (0, Ep - E)))
    bias = jnp.pad(bias, ((0, 0), (0, Ep - E)))

    grid = (Ep // TE, Mp // TM)            # (embed tiles, row tiles)

    out = pl.pallas_call(
        _patch_embed_kernel,
        out_shape=jax.ShapeDtypeStruct((Mp, Ep), jnp.float32),
        grid=grid,
        in_specs=[
            pl.BlockSpec((TM, K), lambda e, m: (m, 0)),    # patches
            pl.BlockSpec((K, TE), lambda e, m: (0, e)),    # weight (resident over m)
            pl.BlockSpec((1, TE), lambda e, m: (0, e)),    # bias
        ],
        out_specs=pl.BlockSpec((TM, TE), lambda e, m: (m, e)),
        compiler_params=pltpu.CompilerParams(
            dimension_semantics=("parallel", "parallel")),
    )(patches, wt, bias)

    out = out[:M, :E].reshape(B, P, E)
    # norm_layer is None in the module defaults -> Identity.
    # TODO(synk): if a norm_layer (e.g. LayerNorm) is configured, fuse it here.
    return out


def patch_embed_reference(x, w, b, *, patch_size, stride):
    """Pure-JAX reference reproducing the PyTorch PatchEmbed forward."""
    dn = ("NCHW", "OIHW", "NCHW")
    y = lax.conv_general_dilated(x, w, (stride, stride), "VALID",
                                 dimension_numbers=dn,
                                 precision=lax.Precision.HIGHEST)
    y = y + b[None, :, None, None]
    B, E, gh, gw = y.shape
    return y.reshape(B, E, gh * gw).transpose(0, 2, 1)      # (B, P, E)


if __name__ == "__main__":
    # Small shapes consistent with the module: (B, C, H, W) with a square
    # patch whose stride equals its size.
    B, C, H, W = 2, 4, 16, 16
    patch = (4, 4)
    stride = 4
    embed_dim = 128

    key = jax.random.PRNGKey(0)
    k0, k1, k2 = jax.random.split(key, 3)
    x = jax.random.uniform(k0, (B, C, H, W), jnp.float32)
    w = jax.random.normal(k1, (embed_dim, C, patch[0], patch[1]),
                          jnp.float32) * 0.05
    b = jax.random.normal(k2, (embed_dim,), jnp.float32) * 0.02

    out = jax.block_until_ready(
        patch_embed(x, w, b, patch_size=patch, stride=stride))
    ref = jax.block_until_ready(
        patch_embed_reference(x, w, b, patch_size=patch, stride=stride))

    num_patches = (H // patch[0]) * (W // patch[1])
    assert out.shape == (B, num_patches, embed_dim)
    np.testing.assert_allclose(np.asarray(out), np.asarray(ref),
                               rtol=2e-3, atol=2e-3)
    print("KERNEL_OK")
</pallas_src>

<mosaic_0001>
module attributes {stable_mosaic.version = 11 : i64} {
  func.func @_patch_embed_kernel(%arg0: i32, %arg1: i32, %arg2: memref<32x64xf32, #tpu.memory_space<vmem>>, %arg3: memref<64x128xf32, #tpu.memory_space<vmem>>, %arg4: memref<1x128xf32, #tpu.memory_space<vmem>>, %arg5: memref<32x128xf32, #tpu.memory_space<vmem>>) attributes {dimension_semantics = [#tpu.dimension_semantics<parallel>, #tpu.dimension_semantics<parallel>], iteration_bounds = array<i64: 1, 1>, scalar_prefetch = 0 : i64, scratch_operands = 0 : i64, tpu.core_type = #tpu.core_type<tc>, window_params = [{transform_indices = @transform_0, window_bounds = array<i64: 32, 64>}, {transform_indices = @transform_1, window_bounds = array<i64: 64, 128>}, {transform_indices = @transform_2, window_bounds = array<i64: 1, 128>}, {transform_indices = @transform_3, window_bounds = array<i64: 32, 128>}]} {
    %c0 = arith.constant 0 : index
    %c0_0 = arith.constant 0 : index
    %0 = vector.load %arg2[%c0, %c0_0] : memref<32x64xf32, #tpu.memory_space<vmem>>, vector<32x64xf32>
    %c0_1 = arith.constant 0 : index
    %c0_2 = arith.constant 0 : index
    %1 = vector.load %arg3[%c0_1, %c0_2] : memref<64x128xf32, #tpu.memory_space<vmem>>, vector<64x128xf32>
    %cst = arith.constant dense<0.000000e+00> : vector<32x128xf32>
    %2 = tpu.matmul %0, %1, %cst {dimension_numbers = #tpu.dot_dimension_numbers<[1], [0], [0], [1], [0, 0, 1, 1], [], []>} : vector<32x64xf32>, vector<64x128xf32>, vector<32x128xf32> -> vector<32x128xf32>
    %c0_3 = arith.constant 0 : index
    %c0_4 = arith.constant 0 : index
    %3 = vector.load %arg4[%c0_3, %c0_4] : memref<1x128xf32, #tpu.memory_space<vmem>>, vector<1x128xf32>
    %4 = vector.broadcast %3 : vector<1x128xf32> to vector<32x128xf32>
    %5 = arith.addf %2, %4 : vector<32x128xf32>
    %c0_5 = arith.constant 0 : index
    %c0_6 = arith.constant 0 : index
    %6 = vector.load %arg5[%c0_5, %c0_6] : memref<32x128xf32, #tpu.memory_space<vmem>>, vector<32x128xf32>
    tpu.vector_store %arg5[%c0_5, %c0_6], %5 {strides = array<i32>} : memref<32x128xf32, #tpu.memory_space<vmem>>, vector<32x128xf32>,
    return
  }
  func.func @transform_0(%arg0: i32, %arg1: i32) -> (i32, i32) {
    %c0_i32 = arith.constant 0 : i32
    %c0_i32_0 = arith.constant 0 : i32
    return %arg1, %c0_i32 : i32, i32
  }
  func.func @transform_1(%arg0: i32, %arg1: i32) -> (i32, i32) {
    %c0_i32 = arith.constant 0 : i32
    %c0_i32_0 = arith.constant 0 : i32
    return %c0_i32, %arg0 : i32, i32
  }
  func.func @transform_2(%arg0: i32, %arg1: i32) -> (i32, i32) {
    %c0_i32 = arith.constant 0 : i32
    %c0_i32_0 = arith.constant 0 : i32
    return %c0_i32, %arg0 : i32, i32
  }
  func.func @transform_3(%arg0: i32, %arg1: i32) -> (i32, i32) {
    %c0_i32 = arith.constant 0 : i32
    return %arg1, %arg0 : i32, i32
  }
}

</mosaic_0001>

<bundles_post_ra>
// kernel: tpu_custom_call.1
= control target key start
LH: loop header
LB: loop body
LE: loop exit
PB: predicated region body
PF: predicated region fallthrough
CT: control target
= control target key end

     0   :  { %8 = vsyncpa [#allocation3], 0  ;;  %s399_s0 = inlined_call_operand.hbm [shape: f32[32,64], index: 0, kind: input, shape index: {}]   ;;  %s400_s1 = inlined_call_operand.hbm [shape: f32[64,128], index: 1, kind: input, shape index: {}]   ;;  %s401_s2 = inlined_call_operand.vmem [shape: f32[1,128], index: 2, kind: input, shape index: {}]   ;;  %s402_s3 = inlined_call_operand.hbm [shape: f32[32,128], index: 3, kind: output, shape index: {}]  }
   0x1   :  { %9 = vsyncpa [#allocation6], 0 }
   0x2   :  { %10 = vsyncpa [#allocation4], 0  ;;  %s322_s12 = smov [#allocation2]   ;;  %s250_s16 = scalar_lea.hbm %s399_s0, 512 }
   0x3   :  { %s16_s13 = sshll.u32 %s322_s12, 4  ;;  %p251_p0 = scmp.ne.s32.totalorder %s399_s0, %s250_s16  ;;  %s17_s13 = int_to_ptr.vmem [resolvable:$true] %s16_s13 }
   0x4   :  { %p254_p1 = scmp.lt.u32.totalorder %s250_s16, %s399_s0 }
   0x6   :  { %p256_p2 = pnand %p254_p1, %p251_p0 }
   0x8   :  { %259 = shalt.err (!%p256_p2)
}
   0x9   :  { %s260_s21 = scalar_lea.vmem %s17_s13, 512  ;;  %p265_p4 = scmp.lt.s32.totalorder %s17_s13, %s17_s13 }
   0xa   :  { %p261_p3 = scmp.ne.s32.totalorder %s17_s13, %s260_s21  ;;  %p266_p5 = scmp.lt.s32.totalorder %s260_s21, %s260_s21 }
   0xc   :  { %p267_p6 = por %p266_p5, %p265_p4 }
   0xe   :  { %p268_p7 = pnand %p267_p6, %p261_p3 }
  0x10   :  { %271 = shalt.err (!%p268_p7)
}
  0x11   :  { %s323_s22 = smov 128   ;;  %s324_s23 = smov 8  }
  0x12   :  { %22 = dma.hbm_to_vmem [thread:$0]  %s399_s0, 512, %s17_s13, [#allocation3], %s323_s22, %s323_s22, %s324_s23  }
  0x13   :  { %s325_s26 = smov [#allocation5]   ;;  %s272_s30 = scalar_lea.hbm %s400_s1, 1024 }
  0x14   :  { %s28_s27 = sshll.u32 %s325_s26, 4  ;;  %p273_p8 = scmp.ne.s32.totalorder %s400_s1, %s272_s30  ;;  %s29_s27 = int_to_ptr.vmem [resolvable:$true] %s28_s27 }
  0x15   :  { %p276_p9 = scmp.lt.u32.totalorder %s272_s30, %s400_s1 }
  0x17   :  { %p278_p10 = pnand %p276_p9, %p273_p8 }
  0x19   :  { %281 = shalt.err (!%p278_p10)
}
  0x1a   :  { %s282_s8 = scalar_lea.vmem %s29_s27, 1024  ;;  %p287_p12 = scmp.lt.s32.totalorder %s29_s27, %s29_s27 }
  0x1b   :  { %p283_p11 = scmp.ne.s32.totalorder %s29_s27, %s282_s8  ;;  %p288_p13 = scmp.lt.s32.totalorder %s282_s8, %s282_s8 }
  0x1d   :  { %p289_p0 = por %p288_p13, %p287_p12 }
  0x1f   :  { %p290_p1 = pnand %p289_p0, %p283_p11 }
  0x21   :  { %293 = shalt.err (!%p290_p1)
}
  0x22   :  { %34 = dma.hbm_to_vmem [thread:$0]  %s400_s1, 1024, %s29_s27, [#allocation6], %s323_s22, %s323_s22, %s324_s23  }
  0x23   :  { %316 = dma.done.wait [#allocation3], 512  }
  0x24   :  { %317 = vsyncadd [#allocation3], 4294966784 }
  0x25   :  { %318 = dma.done.wait [#allocation6], 1024  }
  0x26   :  { %319 = vsyncadd [#allocation6], 4294966272  ;;  %v47_v0 = vld [vmem:[#allocation5] sm:$0xff]  ;;  %v48_v1 = vld [vmem:[#allocation5 + $0x8] sm:$0xff]  ;;  %vm62_vm0 = vcmask 523264   ;;  %s326_s11 = smov [#allocation7]  }
  0x27   :  { %v49_v2 = vld [vmem:[#allocation5 + $0x10] sm:$0xff]  ;;  %v221_v3 = vpack.c.bf16 %v48_v1, %v47_v0  ;;  %v50_v4 = vld [vmem:[#allocation5 + $0x18] sm:$0xff]  ;;  %v51_v6 = vld [vmem:[#allocation5 + $0x20] sm:$0xff]  ;;  %s169_s12 = sshll.u32 %s326_s11, 4  ;;  %s170_s12 = int_to_ptr.vmem [resolvable:$true] %s169_s12 }
  0x28   :  { %v225_v5 = vpack.c.bf16 %v50_v4, %v49_v2  ;;  %v52_v7 = vld [vmem:[#allocation5 + $0x28] sm:$0xff]  ;;  %v43_v8 = vld [vmem:[#allocation2] sm:$0xff]  ;;  %v45_v9 = vld [vmem:[#allocation2 + $0x10] sm:$0xff]  ;;  %s294_s13 = scalar_lea.vmem %s170_s12, 512  ;;  %p299_p3 = scmp.lt.s32.totalorder %s170_s12, %s170_s12 }
  0x29   :  { %222 = vmatprep.subr.bf16.mxu0 %v221_v3  ;;  %237 = vmatprep.subr.bf16.mxu1 %v221_v3  ;;  %v229_v10 = vpack.c.bf16 %v52_v7, %v51_v6  ;;  %v53_v11 = vld [vmem:[#allocation5 + $0x30] sm:$0xff]  ;;  %v54_v12 = vld [vmem:[#allocation5 + $0x38] sm:$0xff]  ;;  %v44_v14 = vld [vmem:[#allocation2 + $0x8] sm:$0xff]  ;;  %p295_p2 = scmp.ne.s32.totalorder %s170_s12, %s294_s13  ;;  %p300_p4 = scmp.lt.s32.totalorder %s294_s13, %s294_s13 }
  0x2a   :  { %224 = vmatpush3.bf16.msra.mxu0 %v221_v3  ;;  %241 = vmatpush3.bf16.msra.mxu1 %v221_v3  ;;  %v233_v13 = vpack.c.bf16 %v54_v12, %v53_v11  ;;  %v46_v15 = vld [vmem:[#allocation2 + $0x18] sm:$0xff]  ;;  %v182_v16 = vld [vmem:[%s401_s2] ss:$0 sm:$0xff] }
  0x2b   :  { %226 = vmatprep.subr.bf16.mxu0 %v225_v5  ;;  %238 = vmatprep.subr.bf16.mxu1 %v225_v5  ;;  %p301_p5 = por %p300_p4, %p299_p3 }
  0x2c   :  { %215 = vmatprep.mubr.msk.f32.mxu0 %vm62_vm0, %v43_v8  ;;  %218 = vmatprep.mubr.msk.f32.mxu1 %vm62_vm0, %v45_v9 }
  0x2d   :  { %p302_p6 = pnand %p301_p5, %p295_p2 }
  0x2e   :  { %228 = vmatpush3.bf16.msra.mxu0 %v225_v5  ;;  %242 = vmatpush3.bf16.msra.mxu1 %v225_v5 }
  0x2f   :  { %230 = vmatprep.subr.bf16.mxu0 %v229_v10  ;;  %239 = vmatprep.subr.bf16.mxu1 %v229_v10 }
  0x32   :  { %232 = vmatpush3.bf16.msra.mxu0 %v229_v10  ;;  %243 = vmatpush3.bf16.msra.mxu1 %v229_v10 }
  0x33   :  { %234 = vmatprep.subr.bf16.mxu0 %v233_v13  ;;  %240 = vmatprep.subr.bf16.mxu1 %v233_v13 }
  0x36   :  { %236 = vmatpush3.bf16.msra.mxu0 %v233_v13  ;;  %244 = vmatpush3.bf16.msra.mxu1 %v233_v13 }
  0x39   :  { %216 = vmatmul.mubr.msk.f32.vlgmr.msra.gmra.mrb[0].mxu0 %vm62_vm0, %v44_v14  ;;  %219 = vmatmul.mubr.msk.f32.vlgmr.msra.gmra.mrb[0].mxu1 %vm62_vm0, %v46_v15 }
 0x10c   :  { %v217_v17 = vpop.f32.mrb[0].mxu0  ;;  %v220_v18 = vpop.f32.mrb[0].mxu1 }
 0x10d   :  { %v147_v19 = vadd.f32 %v217_v17, %v182_v16  ;;  %v157_v20 = vadd.f32 %v220_v18, %v182_v16  ;;  %v141_v21 = vpop.f32.mrb[1].mxu0  ;;  %v151_v22 = vpop.f32.mrb[1].mxu1 }
 0x10e   :  { %v142_v23 = vadd.f32 %v182_v16, %v141_v21  ;;  %v152_v24 = vadd.f32 %v182_v16, %v151_v22 }
 0x10f   :  { %161 = vst [vmem:[#allocation7 + $0x8] sm:$0xff] %v147_v19  ;;  %163 = vst [vmem:[#allocation7 + $0x18] sm:$0xff] %v157_v20 }
 0x110   :  { %160 = vst [vmem:[#allocation7] sm:$0xff] %v142_v23  ;;  %162 = vst [vmem:[#allocation7 + $0x10] sm:$0xff] %v152_v24 }
 0x111   :  { %305 = shalt.err (!%p302_p6)
}
 0x112   :  { %s306_s15 = scalar_lea.hbm %s402_s3, 512 }
 0x113   :  { %p307_p7 = scmp.ne.s32.totalorder %s402_s3, %s306_s15  ;;  %p310_p8 = scmp.lt.u32.totalorder %s306_s15, %s402_s3 }
 0x115   :  { %p312_p9 = pnand %p310_p8, %p307_p7 }
 0x117   :  { %315 = shalt.err (!%p312_p9)
}
 0x118   :  { %175 = dma.vmem_to_hbm [thread:$0]  %s170_s12, 512, %s402_s3, [#allocation4], %s323_s22, %s323_s22, %s324_s23  }
 0x119   :  { %320 = dma.done.wait [#allocation4], 512  }
 0x11a   :  { %321 = vsyncadd [#allocation4], 4294966784 }
 0x11b   :  { %179 = vsyncpa [#allocation3], 1 }
 0x11c   :  { %180 = vsyncpa [#allocation6], 1 }
 0x11d   :  { %181 = vsyncpa [#allocation4], 1 }

</bundles_post_ra>
